<compile_context>
chip_gen: v5e
topology: v5e:2x2
jax: 0.10.0
libtpu: 0.0.40
codegen_flags: <defaults>
</compile_context>

<pallas_src>
import math

import jax
import jax.numpy as jnp
from jax.experimental import pallas as pl
from jax.experimental.pallas import tpu as pltpu

LANE = 128        # v5e-native lane padding; use 256 on v6e/v7x when real
                  # hidden/latent dims exceed 128.
ROW_ALIGN = 16    # bf16 sublane packing -> batch tiles in multiples of 16.


def _round_up(x, m):
    return ((x + m - 1) // m) * m


def _cdiv(a, b):
    return -(-a // b)


def _sigmoid(x):
    # sigmoid(x) = 0.5*(tanh(x/2)+1): a single EUP op (tanh) instead of
    # exp + reciprocal; keeps the VALU free and avoids approx-recip error.
    return 0.5 * (jnp.tanh(0.5 * x) + 1.0)


def ae_kernel(x_ref,
              we1_ref, be1_ref, we2_ref, be2_ref,
              wd1_ref, bd1_ref, wd2_ref, bd2_ref,
              out_ref):
    """One batch tile of the full AE forward; weights are VMEM-resident.

    x / weights are bf16; accumulation, bias-add and sigmoid math are f32.
    z occupies lanes [0:L) and the reconstruction lanes [L:L+OUT) of the
    same lane-dense (TM, PADW) slab -> one unmasked full-width store.
    """
    x = x_ref[...]                                                    # bf16

    # ---- Encoder ----
    h = _sigmoid(jnp.dot(x, we1_ref[...],
                         preferred_element_type=jnp.float32) + be1_ref[...])
    z = jnp.dot(h.astype(jnp.bfloat16), we2_ref[...],
                preferred_element_type=jnp.float32) + be2_ref[...]    # (TM, PADW)

    # ---- Decoder ----
    g = _sigmoid(jnp.dot(z.astype(jnp.bfloat16), wd1_ref[...],
                         preferred_element_type=jnp.float32) + bd1_ref[...])
    r = jnp.dot(g.astype(jnp.bfloat16), wd2_ref[...],
                preferred_element_type=jnp.float32) + bd2_ref[...]    # (TM, PADW)

    # Disjoint non-zero lanes (zero-padded weights/biases) -> a single VPU
    # add packs z and reco into one lane-dense slab.
    out_ref[...] = (z + r).astype(out_ref.dtype)


def prepare_padded_params(p, *, pad_multiple=LANE):
    """Zero-pad weights/biases to lane-dense feature dims (done once).

    Weights are stored in bf16 (HBM/MXU), biases in f32.  Returns
    (padded_params, meta).
    """
    we1, be1 = p["we1"], p["be1"]   # (D_in, H1), (1, H1)
    we2, be2 = p["we2"], p["be2"]   # (H1, L),   (1, L)
    wd1, bd1 = p["wd1"], p["bd1"]   # (L, H2),   (1, H2)
    wd2, bd2 = p["wd2"], p["bd2"]   # (H2, OUT), (1, OUT)

    d_in, h1 = we1.shape
    latent = we2.shape[1]
    h2 = wd1.shape[1]
    out_dim = wd2.shape[1]

    h1p = _round_up(h1, pad_multiple)
    h2p = _round_up(h2, pad_multiple)
    padw = _round_up(latent + out_dim, pad_multiple)
    reco_off = latent

    # Packing invariants: z lanes [0:latent) and reco lanes
    # [reco_off:reco_off+out_dim) must be disjoint and inside the slab, and
    # the decoder input width must equal the latent width.  (pad2 guarantees
    # the padded rows / lanes are exact zeros.)
    assert wd1.shape[0] == latent
    assert reco_off == latent and latent + out_dim <= padw

    def pad2(a, rows, cols, dtype, roff=0, coff=0):
        buf = jnp.zeros((rows, cols), dtype)
        return buf.at[roff:roff + a.shape[0],
                      coff:coff + a.shape[1]].set(a.astype(dtype))

    bf16, f32 = jnp.bfloat16, jnp.float32
    padded = {
        "we1": pad2(we1, d_in, h1p, bf16), "be1": pad2(be1, 1, h1p, f32),
        "we2": pad2(we2, h1p, padw, bf16), "be2": pad2(be2, 1, padw, f32),
        "wd1": pad2(wd1, padw, h2p, bf16), "bd1": pad2(bd1, 1, h2p, f32),
        "wd2": pad2(wd2, h2p, padw, bf16, coff=reco_off),
        "bd2": pad2(bd2, 1, padw, f32, coff=reco_off),
    }
    meta = dict(d_in=d_in, h1=h1, latent=latent, h2=h2, out=out_dim,
                h1p=h1p, h2p=h2p, padw=padw, reco_off=reco_off)
    return padded, meta


def _batch_tiling(B, block_rows):
    """Pick (tm, grid): tm multiple of ROW_ALIGN, minimal padding, and an
    even grid (>=2) whenever B allows so both v7x TensorCores get work."""
    grid = max(1, _cdiv(B, block_rows))
    if grid == 1 and B > ROW_ALIGN:
        grid = 2
    if grid > 1 and grid % 2 == 1:
        grid += 1
    tm = _round_up(_cdiv(B, grid), ROW_ALIGN)
    return tm, grid


def ae_forward(data, padded_params, meta, *, block_rows=1024, unpack=True):
    """Fused AE forward.  Returns dict matching PyTorch AE.forward
    (plus the raw packed output slab under 'packed')."""
    B, d_in = data.shape
    assert d_in == meta["d_in"]
    latent, out_dim = meta["latent"], meta["out"]
    padw, reco_off = meta["padw"], meta["reco_off"]

    tm, grid = _batch_tiling(B, block_rows)
    b_pad = tm * grid

    x = data.astype(jnp.bfloat16)
    if b_pad != B:
        x = jnp.pad(x, ((0, b_pad - B), (0, 0)))

    p = padded_params
    w_args = (p["we1"], p["be1"], p["we2"], p["be2"],
              p["wd1"], p["bd1"], p["wd2"], p["bd2"])
    # Constant index_map -> VMEM-resident across grid steps; Buffered(1)
    # single-buffers them (they never re-DMA), halving their VMEM footprint.
    const_specs = [pl.BlockSpec(a.shape, lambda i: (0, 0),
                                pipeline_mode=pl.Buffered(1))
                   for a in w_args]

    weight_bytes = sum(int(a.size) * a.dtype.itemsize for a in w_args)
    # Double-buffered x/out tiles + single-buffered weights + f32
    # intermediates, with 2x headroom; clamped to v7x's 64 MiB physical VMEM.
    buf_bytes = (2 * tm * d_in * 2 + 2 * tm * padw * 4 + weight_bytes
                 + tm * (meta["h1p"] + meta["h2p"] + 2 * padw) * 4)
    vmem_limit = int(min(64 * 1024 * 1024,
                         max(16 * 1024 * 1024, 2 * buf_bytes)))

    flops = 2 * b_pad * (meta["d_in"] * meta["h1"] + meta["h1"] * latent
                         + latent * meta["h2"] + meta["h2"] * out_dim)
    transcendentals = b_pad * (meta["h1p"] + meta["h2p"])
    bytes_accessed = 2 * b_pad * d_in + 4 * b_pad * padw + weight_bytes

    out = pl.pallas_call(
        ae_kernel,
        out_shape=jax.ShapeDtypeStruct((b_pad, padw), jnp.float32),
        grid=(grid,),
        in_specs=[pl.BlockSpec((tm, d_in), lambda i: (i, 0))] + const_specs,
        out_specs=pl.BlockSpec((tm, padw), lambda i: (i, 0)),
        compiler_params=pltpu.CompilerParams(
            dimension_semantics=("parallel",),
            vmem_limit_bytes=vmem_limit,
        ),
        cost_estimate=pl.CostEstimate(
            flops=flops,
            transcendentals=transcendentals,
            bytes_accessed=bytes_accessed,
        ),
    )(x, *w_args)

    result = {"data": data, "packed": out}
    if unpack:
        # TODO(synk): at large batch, consume the packed slab directly
        # (lanes [0:L)=z, [L:L+OUT)=reco); these slices are extra XLA copies
        # of the dominant HBM stream.
        result["mu"] = out[:B, :latent]
        result["reco"] = out[:B, reco_off:reco_off + out_dim]
    return result


def _init_linear(key, in_dim, out_dim):
    """Mirrors PyTorch's default U(-1/sqrt(fan_in), 1/sqrt(fan_in)) init."""
    kw, kb = jax.random.split(key)
    bound = 1.0 / math.sqrt(in_dim)
    w = jax.random.uniform(kw, (in_dim, out_dim), jnp.float32, -bound, bound)
    b = jax.random.uniform(kb, (1, out_dim), jnp.float32, -bound, bound)
    return w, b


def make_params(key, enc_dim, dec_dim, latent_dim):
    k1, k2, k3, k4 = jax.random.split(key, 4)
    we1, be1 = _init_linear(k1, enc_dim[0], enc_dim[1])   # enc hidden
    we2, be2 = _init_linear(k2, enc_dim[1], latent_dim)   # enc -> latent
    wd1, bd1 = _init_linear(k3, latent_dim, dec_dim[0])   # dec hidden
    wd2, bd2 = _init_linear(k4, dec_dim[0], dec_dim[1])   # dec -> output
    return {"we1": we1, "be1": be1, "we2": we2, "be2": be2,
            "wd1": wd1, "bd1": bd1, "wd2": wd2, "bd2": bd2}


def _reference_forward(data, p, quantized=False):
    """Pure-JAX reference.  quantized=True mirrors the kernel's bf16
    storage (bf16 operands, f32 accumulation) for a tight check."""
    def mm(a, w):
        if quantized:
            return jnp.dot(a.astype(jnp.bfloat16), w.astype(jnp.bfloat16),
                           preferred_element_type=jnp.float32)
        return a @ w
    h = jax.nn.sigmoid(mm(data, p["we1"]) + p["be1"])
    z = mm(h, p["we2"]) + p["be2"]
    g = jax.nn.sigmoid(mm(z, p["wd1"]) + p["bd1"])
    reco = mm(g, p["wd2"]) + p["bd2"]
    return z, reco


if __name__ == "__main__":
    # AE(enc_dim=[32,16], dec_dim=[16,32], latent_dim=8), small batch.
    batch = 8
    enc_dim = [32, 16]
    dec_dim = [16, 32]
    latent_dim = 8

    key = jax.random.PRNGKey(0)
    kdata, kparams = jax.random.split(key)

    data = jax.random.normal(kdata, (batch, enc_dim[0]), dtype=jnp.float32)
    params = make_params(kparams, enc_dim, dec_dim, latent_dim)
    padded, meta = prepare_padded_params(params)

    fwd = jax.jit(lambda x: ae_forward(x, padded, meta))
    out = fwd(data)
    jax.block_until_ready(out)

    assert out["data"].shape == (batch, enc_dim[0])
    assert out["mu"].shape == (batch, latent_dim)
    assert out["reco"].shape == (batch, dec_dim[-1])

    # Tight check vs a bf16-storage-matched reference (same math as kernel).
    z_q, reco_q = _reference_forward(data, params, quantized=True)
    assert jnp.allclose(out["mu"], z_q, atol=5e-3, rtol=5e-3)
    assert jnp.allclose(out["reco"], reco_q, atol=5e-3, rtol=5e-3)

    # Loose check vs the exact f32 PyTorch-equivalent forward (bf16 weight /
    # activation storage is the only divergence source).
    z_ref, reco_ref = _reference_forward(data, params)
    assert jnp.allclose(out["mu"], z_ref, atol=5e-2, rtol=5e-2)
    assert jnp.allclose(out["reco"], reco_ref, atol=5e-2, rtol=5e-2)

    print("KERNEL_OK")
</pallas_src>

<mosaic_0001>
module attributes {stable_mosaic.version = 11 : i64} {
  func.func @ae_kernel(%arg0: i32, %arg1: memref<16x32xbf16, #tpu.memory_space<vmem>>, %arg2: memref<32x128xbf16, #tpu.memory_space<vmem>>, %arg3: memref<1x128xf32, #tpu.memory_space<vmem>>, %arg4: memref<128x128xbf16, #tpu.memory_space<vmem>>, %arg5: memref<1x128xf32, #tpu.memory_space<vmem>>, %arg6: memref<128x128xbf16, #tpu.memory_space<vmem>>, %arg7: memref<1x128xf32, #tpu.memory_space<vmem>>, %arg8: memref<128x128xbf16, #tpu.memory_space<vmem>>, %arg9: memref<1x128xf32, #tpu.memory_space<vmem>>, %arg10: memref<16x128xf32, #tpu.memory_space<vmem>>) attributes {dimension_semantics = [#tpu.dimension_semantics<parallel>], iteration_bounds = array<i64: 1>, scalar_prefetch = 0 : i64, scratch_operands = 0 : i64, tpu.core_type = #tpu.core_type<tc>, window_params = [{transform_indices = @transform_0, window_bounds = array<i64: 16, 32>}, {pipeline_mode = #tpu.pipeline_mode<synchronous>, transform_indices = @transform_1, window_bounds = array<i64: 32, 128>}, {pipeline_mode = #tpu.pipeline_mode<synchronous>, transform_indices = @transform_2, window_bounds = array<i64: 1, 128>}, {pipeline_mode = #tpu.pipeline_mode<synchronous>, transform_indices = @transform_3, window_bounds = array<i64: 128, 128>}, {pipeline_mode = #tpu.pipeline_mode<synchronous>, transform_indices = @transform_4, window_bounds = array<i64: 1, 128>}, {pipeline_mode = #tpu.pipeline_mode<synchronous>, transform_indices = @transform_5, window_bounds = array<i64: 128, 128>}, {pipeline_mode = #tpu.pipeline_mode<synchronous>, transform_indices = @transform_6, window_bounds = array<i64: 1, 128>}, {pipeline_mode = #tpu.pipeline_mode<synchronous>, transform_indices = @transform_7, window_bounds = array<i64: 128, 128>}, {pipeline_mode = #tpu.pipeline_mode<synchronous>, transform_indices = @transform_8, window_bounds = array<i64: 1, 128>}, {transform_indices = @transform_9, window_bounds = array<i64: 16, 128>}]} {
    %c0 = arith.constant 0 : index
    %c0_0 = arith.constant 0 : index
    %0 = vector.load %arg1[%c0, %c0_0] : memref<16x32xbf16, #tpu.memory_space<vmem>>, vector<16x32xbf16>
    %c0_1 = arith.constant 0 : index
    %c0_2 = arith.constant 0 : index
    %1 = vector.load %arg2[%c0_1, %c0_2] : memref<32x128xbf16, #tpu.memory_space<vmem>>, vector<32x128xbf16>
    %cst = arith.constant dense<0.000000e+00> : vector<16x128xf32>
    %2 = tpu.matmul %0, %1, %cst {dimension_numbers = #tpu.dot_dimension_numbers<[1], [0], [0], [1], [0, 0, 1, 1], [], []>} : vector<16x32xbf16>, vector<32x128xbf16>, vector<16x128xf32> -> vector<16x128xf32>
    %c0_3 = arith.constant 0 : index
    %c0_4 = arith.constant 0 : index
    %3 = vector.load %arg3[%c0_3, %c0_4] : memref<1x128xf32, #tpu.memory_space<vmem>>, vector<1x128xf32>
    %4 = vector.broadcast %3 : vector<1x128xf32> to vector<16x128xf32>
    %5 = arith.addf %2, %4 : vector<16x128xf32>
    %cst_5 = arith.constant 5.000000e-01 : f32
    %6 = vector.broadcast %cst_5 : f32 to vector<16x128xf32>
    %7 = arith.mulf %6, %5 : vector<16x128xf32>
    %8 = math.tanh %7 : vector<16x128xf32>
    %cst_6 = arith.constant 1.000000e+00 : f32
    %9 = vector.broadcast %cst_6 : f32 to vector<16x128xf32>
    %10 = arith.addf %8, %9 : vector<16x128xf32>
    %cst_7 = arith.constant 5.000000e-01 : f32
    %11 = vector.broadcast %cst_7 : f32 to vector<16x128xf32>
    %12 = arith.mulf %11, %10 : vector<16x128xf32>
    %13 = arith.truncf %12 : vector<16x128xf32> to vector<16x128xbf16>
    %c0_8 = arith.constant 0 : index
    %c0_9 = arith.constant 0 : index
    %14 = vector.load %arg4[%c0_8, %c0_9] : memref<128x128xbf16, #tpu.memory_space<vmem>>, vector<128x128xbf16>
    %cst_10 = arith.constant dense<0.000000e+00> : vector<16x128xf32>
    %15 = tpu.matmul %13, %14, %cst_10 {dimension_numbers = #tpu.dot_dimension_numbers<[1], [0], [0], [1], [0, 0, 1, 1], [], []>} : vector<16x128xbf16>, vector<128x128xbf16>, vector<16x128xf32> -> vector<16x128xf32>
    %c0_11 = arith.constant 0 : index
    %c0_12 = arith.constant 0 : index
    %16 = vector.load %arg5[%c0_11, %c0_12] : memref<1x128xf32, #tpu.memory_space<vmem>>, vector<1x128xf32>
    %17 = vector.broadcast %16 : vector<1x128xf32> to vector<16x128xf32>
    %18 = arith.addf %15, %17 : vector<16x128xf32>
    %19 = arith.truncf %18 : vector<16x128xf32> to vector<16x128xbf16>
    %c0_13 = arith.constant 0 : index
    %c0_14 = arith.constant 0 : index
    %20 = vector.load %arg6[%c0_13, %c0_14] : memref<128x128xbf16, #tpu.memory_space<vmem>>, vector<128x128xbf16>
    %cst_15 = arith.constant dense<0.000000e+00> : vector<16x128xf32>
    %21 = tpu.matmul %19, %20, %cst_15 {dimension_numbers = #tpu.dot_dimension_numbers<[1], [0], [0], [1], [0, 0, 1, 1], [], []>} : vector<16x128xbf16>, vector<128x128xbf16>, vector<16x128xf32> -> vector<16x128xf32>
    %c0_16 = arith.constant 0 : index
    %c0_17 = arith.constant 0 : index
    %22 = vector.load %arg7[%c0_16, %c0_17] : memref<1x128xf32, #tpu.memory_space<vmem>>, vector<1x128xf32>
    %23 = vector.broadcast %22 : vector<1x128xf32> to vector<16x128xf32>
    %24 = arith.addf %21, %23 : vector<16x128xf32>
    %cst_18 = arith.constant 5.000000e-01 : f32
    %25 = vector.broadcast %cst_18 : f32 to vector<16x128xf32>
    %26 = arith.mulf %25, %24 : vector<16x128xf32>
    %27 = math.tanh %26 : vector<16x128xf32>
    %cst_19 = arith.constant 1.000000e+00 : f32
    %28 = vector.broadcast %cst_19 : f32 to vector<16x128xf32>
    %29 = arith.addf %27, %28 : vector<16x128xf32>
    %cst_20 = arith.constant 5.000000e-01 : f32
    %30 = vector.broadcast %cst_20 : f32 to vector<16x128xf32>
    %31 = arith.mulf %30, %29 : vector<16x128xf32>
    %32 = arith.truncf %31 : vector<16x128xf32> to vector<16x128xbf16>
    %c0_21 = arith.constant 0 : index
    %c0_22 = arith.constant 0 : index
    %33 = vector.load %arg8[%c0_21, %c0_22] : memref<128x128xbf16, #tpu.memory_space<vmem>>, vector<128x128xbf16>
    %cst_23 = arith.constant dense<0.000000e+00> : vector<16x128xf32>
    %34 = tpu.matmul %32, %33, %cst_23 {dimension_numbers = #tpu.dot_dimension_numbers<[1], [0], [0], [1], [0, 0, 1, 1], [], []>} : vector<16x128xbf16>, vector<128x128xbf16>, vector<16x128xf32> -> vector<16x128xf32>
    %c0_24 = arith.constant 0 : index
    %c0_25 = arith.constant 0 : index
    %35 = vector.load %arg9[%c0_24, %c0_25] : memref<1x128xf32, #tpu.memory_space<vmem>>, vector<1x128xf32>
    %36 = vector.broadcast %35 : vector<1x128xf32> to vector<16x128xf32>
    %37 = arith.addf %34, %36 : vector<16x128xf32>
    %38 = arith.addf %18, %37 : vector<16x128xf32>
    %c0_26 = arith.constant 0 : index
    %c0_27 = arith.constant 0 : index
    %39 = vector.load %arg10[%c0_26, %c0_27] : memref<16x128xf32, #tpu.memory_space<vmem>>, vector<16x128xf32>
    tpu.vector_store %arg10[%c0_26, %c0_27], %38 {strides = array<i32>} : memref<16x128xf32, #tpu.memory_space<vmem>>, vector<16x128xf32>,
    return
  }
  func.func @transform_0(%arg0: i32) -> (i32, i32) {
    %c0_i32 = arith.constant 0 : i32
    %c0_i32_0 = arith.constant 0 : i32
    return %arg0, %c0_i32 : i32, i32
  }
  func.func @transform_1(%arg0: i32) -> (i32, i32) {
    %c0_i32 = arith.constant 0 : i32
    %c0_i32_0 = arith.constant 0 : i32
    %c0_i32_1 = arith.constant 0 : i32
    return %c0_i32, %c0_i32_0 : i32, i32
  }
  func.func @transform_2(%arg0: i32) -> (i32, i32) {
    %c0_i32 = arith.constant 0 : i32
    %c0_i32_0 = arith.constant 0 : i32
    %c0_i32_1 = arith.constant 0 : i32
    return %c0_i32, %c0_i32_0 : i32, i32
  }
  func.func @transform_3(%arg0: i32) -> (i32, i32) {
    %c0_i32 = arith.constant 0 : i32
    %c0_i32_0 = arith.constant 0 : i32
    %c0_i32_1 = arith.constant 0 : i32
    return %c0_i32, %c0_i32_0 : i32, i32
  }
  func.func @transform_4(%arg0: i32) -> (i32, i32) {
    %c0_i32 = arith.constant 0 : i32
    %c0_i32_0 = arith.constant 0 : i32
    %c0_i32_1 = arith.constant 0 : i32
    return %c0_i32, %c0_i32_0 : i32, i32
  }
  func.func @transform_5(%arg0: i32) -> (i32, i32) {
    %c0_i32 = arith.constant 0 : i32
    %c0_i32_0 = arith.constant 0 : i32
    %c0_i32_1 = arith.constant 0 : i32
    return %c0_i32, %c0_i32_0 : i32, i32
  }
  func.func @transform_6(%arg0: i32) -> (i32, i32) {
    %c0_i32 = arith.constant 0 : i32
    %c0_i32_0 = arith.constant 0 : i32
    %c0_i32_1 = arith.constant 0 : i32
    return %c0_i32, %c0_i32_0 : i32, i32
  }
  func.func @transform_7(%arg0: i32) -> (i32, i32) {
    %c0_i32 = arith.constant 0 : i32
    %c0_i32_0 = arith.constant 0 : i32
    %c0_i32_1 = arith.constant 0 : i32
    return %c0_i32, %c0_i32_0 : i32, i32
  }
  func.func @transform_8(%arg0: i32) -> (i32, i32) {
    %c0_i32 = arith.constant 0 : i32
    %c0_i32_0 = arith.constant 0 : i32
    %c0_i32_1 = arith.constant 0 : i32
    return %c0_i32, %c0_i32_0 : i32, i32
  }
  func.func @transform_9(%arg0: i32) -> (i32, i32) {
    %c0_i32 = arith.constant 0 : i32
    %c0_i32_0 = arith.constant 0 : i32
    return %arg0, %c0_i32 : i32, i32
  }
}

</mosaic_0001>

<bundles_post_ra>
// kernel: _lambda_.1
= control target key start
LH: loop header
LB: loop body
LE: loop exit
PB: predicated region body
PF: predicated region fallthrough
CT: control target
= control target key end

     0   :  { %14 = vsyncpa [#allocation3], 0  ;;  %s720_s0 = inlined_call_operand.vmem [shape: bf16[16,32], index: 0, kind: input, shape index: {}]   ;;  %s721_s1 = inlined_call_operand.vmem [shape: bf16[32,128], index: 1, kind: input, shape index: {}]   ;;  %s722_s2 = inlined_call_operand.vmem [shape: f32[1,128], index: 2, kind: input, shape index: {}]   ;;  %s723_s3 = inlined_call_operand.hbm [shape: bf16[128,128], index: 3, kind: input, shape index: {}]   ;;  %s724_s4 = inlined_call_operand.vmem [shape: f32[1,128], index: 4, kind: input, shape index: {}]   ;;  %s725_s5 = inlined_call_operand.hbm [shape: bf16[128,128], index: 5, kind: input, shape index: {}]   ;;  %s726_s6 = inlined_call_operand.vmem [shape: f32[1,128], index: 6, kind: input, shape index: {}]   ;;  %s727_s7 = inlined_call_operand.hbm [shape: bf16[128,128], index: 7, kind: input, shape index: {}]   ;;  %s728_s8 = inlined_call_operand.vmem [shape: f32[1,128], index: 8, kind: input, shape index: {}]   ;;  %s729_s9 = inlined_call_operand.vmem [shape: f32[16,128], index: 9, kind: output, shape index: {}]  }
   0x1   :  { %15 = vsyncpa [#allocation5], 0  ;;  %s41_s11 = sshll.u32 %s725_s5, 4  ;;  %s629_s12 = smov [#allocation4]   ;;  %s42_s11 = int_to_ptr.hbm [resolvable:$true] %s41_s11 }
   0x2   :  { %s43_s13 = sshll.u32 %s629_s12, 4  ;;  %s26_s16 = sshll.u32 %s723_s3, 4  ;;  %s44_s13 = int_to_ptr.vmem [resolvable:$true] %s43_s13  ;;  %s27_s16 = int_to_ptr.hbm [resolvable:$true] %s26_s16 }
   0x3   :  { %s630_s17 = smov 64   ;;  %s631_s18 = smov 4  }
   0x4   :  { %49 = dma.hbm_to_vmem [thread:$0]  %s42_s11, 1024, %s44_s13, [#allocation5], %s630_s17, %s630_s17, %s631_s18  }
   0x5   :  { %s632_s19 = smov [#allocation2]   ;;  %s56_s23 = sshll.u32 %s727_s7, 4  ;;  %s57_s23 = int_to_ptr.hbm [resolvable:$true] %s56_s23 }
   0x6   :  { %s28_s20 = sshll.u32 %s632_s19, 4  ;;  %s633_s5 = smov [#allocation6]   ;;  %s29_s20 = int_to_ptr.vmem [resolvable:$true] %s28_s20 }
   0x7   :  { %34 = dma.hbm_to_vmem [thread:$0]  %s27_s16, 1024, %s29_s20, [#allocation3], %s630_s17, %s630_s17, %s631_s18  }
   0x8   :  { %s58_s24 = sshll.u32 %s633_s5, 4  ;;  %s59_s24 = int_to_ptr.vmem [resolvable:$true] %s58_s24 }
   0x9   :  { %64 = dma.hbm_to_vmem [thread:$0]  %s57_s23, 1024, %s59_s24, [#allocation5], %s630_s17, %s630_s17, %s631_s18  }
   0xa   :  { %625 = dma.done.wait [#allocation3], 1024  }
   0xb   :  { %626 = vsyncadd [#allocation3], 4294966272 }
   0xc   :  { %627 = dma.done.wait [#allocation5], 2048  }
   0xd   :  { %628 = vsyncadd [#allocation5], 4294965248  ;;  %v511_v0 = vld [vmem:[%s721_s1 + $0x8] sm:$0xff]  ;;  %v519_v1 = vld [vmem:[#allocation2 + $0x38] sm:$0xff]  ;;  %vm107_vm0 = vcmask 261120  }
   0xe   :  { %117 = vmatpush.bf16.msra.mxu0 %v511_v0  ;;  %v510_v2 = vld [vmem:[%s721_s1] sm:$0xff]  ;;  %202 = vmatpush.bf16.msra.mxu1 %v519_v1  ;;  %v518_v3 = vld [vmem:[#allocation2 + $0x30] sm:$0xff]  ;;  %v517_v5 = vld [vmem:[#allocation2 + $0x28] sm:$0xff] }
   0xf   :  { %v509_v4 = vld [vmem:[%s720_s0] sm:$0xff]  ;;  %v515_v7 = vld [vmem:[#allocation2 + $0x18] sm:$0xff]  ;;  %v514_v8 = vld [vmem:[#allocation2 + $0x10] sm:$0xff] }
  0x10   :  { %v516_v6 = vld [vmem:[#allocation2 + $0x20] sm:$0xff]  ;;  %v513_v9 = vld [vmem:[#allocation2 + $0x8] sm:$0xff]  ;;  %v527_v11 = vld [vmem:[#allocation4 + $0x38] sm:$0xff] }
  0x11   :  { %v512_v10 = vld [vmem:[#allocation2] sm:$0xff]  ;;  %285 = vmatpush.bf16.msra.mxu2 %v527_v11  ;;  %v526_v12 = vld [vmem:[#allocation4 + $0x30] sm:$0xff]  ;;  %v525_v15 = vld [vmem:[#allocation4 + $0x28] sm:$0xff] }
  0x12   :  { %118 = vmatpush.bf16.msra.mxu0 %v510_v2  ;;  %203 = vmatpush.bf16.msra.mxu1 %v518_v3  ;;  %v541_v13 = vld [vmem:[%s722_s2] ss:$0 sm:$0xff]  ;;  %v523_v20 = vld [vmem:[#allocation4 + $0x18] sm:$0xff]  ;;  %v522_v30 = vld [vmem:[#allocation4 + $0x10] sm:$0xff] }
  0x13   :  { %v524_v17 = vld [vmem:[#allocation4 + $0x20] sm:$0xff]  ;;  %v521_v31 = vld [vmem:[#allocation4 + $0x8] sm:$0xff]  ;;  %v535_v33 = vld [vmem:[#allocation6 + $0x38] sm:$0xff] }
  0x14   :  { %v520_v32 = vld [vmem:[#allocation4] sm:$0xff]  ;;  %376 = vmatpush.bf16.msra.mxu3 %v535_v33  ;;  %v534_v34 = vld [vmem:[#allocation6 + $0x30] sm:$0xff]  ;;  %v533_v41 = vld [vmem:[#allocation6 + $0x28] sm:$0xff] }
  0x15   :  { %412 = vmatmul.msk.bf16.vlgmr.msra.gmra.mxu0 %vm107_vm0, %v509_v4  ;;  %286 = vmatpush.bf16.msra.mxu2 %v526_v12  ;;  %v542_v36 = vld [vmem:[%s724_s4] ss:$0 sm:$0xff]  ;;  %v531_v43 = vld [vmem:[#allocation6 + $0x18] sm:$0xff]  ;;  %v530_v44 = vld [vmem:[#allocation6 + $0x10] sm:$0xff] }
  0x16   :  { %204 = vmatpush.bf16.msra.mxu1 %v517_v5  ;;  %v532_v42 = vld [vmem:[#allocation6 + $0x20] sm:$0xff]  ;;  %v529_v45 = vld [vmem:[#allocation6 + $0x8] sm:$0xff] }
  0x17   :  { %v528_v46 = vld [vmem:[#allocation6] sm:$0xff] }
  0x18   :  { %377 = vmatpush.bf16.msra.mxu3 %v534_v34  ;;  %v543_v47 = vld [vmem:[%s726_s6] ss:$0 sm:$0xff] }
  0x19   :  { %287 = vmatpush.bf16.msra.mxu2 %v525_v15  ;;  %v544_v61 = vld [vmem:[%s728_s8] ss:$0 sm:$0xff] }
  0x1a   :  { %205 = vmatpush.bf16.msra.mxu1 %v516_v6 }
  0x1c   :  { %378 = vmatpush.bf16.msra.mxu3 %v533_v41 }
  0x1d   :  { %288 = vmatpush.bf16.msra.mxu2 %v524_v17 }
  0x1e   :  { %206 = vmatpush.bf16.msra.mxu1 %v515_v7 }
  0x20   :  { %379 = vmatpush.bf16.msra.mxu3 %v532_v42 }
  0x21   :  { %289 = vmatpush.bf16.msra.mxu2 %v523_v20 }
  0x22   :  { %207 = vmatpush.bf16.msra.mxu1 %v514_v8 }
  0x24   :  { %380 = vmatpush.bf16.msra.mxu3 %v531_v43 }
  0x25   :  { %290 = vmatpush.bf16.msra.mxu2 %v522_v30 }
  0x26   :  { %208 = vmatpush.bf16.msra.mxu1 %v513_v9 }
  0x28   :  { %381 = vmatpush.bf16.msra.mxu3 %v530_v44 }
  0x29   :  { %291 = vmatpush.bf16.msra.mxu2 %v521_v31 }
  0x2a   :  { %209 = vmatpush.bf16.msra.mxu1 %v512_v10 }
  0x2c   :  { %382 = vmatpush.bf16.msra.mxu3 %v529_v45 }
  0x2d   :  { %292 = vmatpush.bf16.msra.mxu2 %v520_v32 }
  0x30   :  { %383 = vmatpush.bf16.msra.mxu3 %v528_v46 }
  0x92   :  { %v120_v14 = vpop.f32.mrf.mxu0 }
  0x93   :  { %v121_v16 = vadd.f32 %v541_v13, %v120_v14 }
  0x95   :  { %v125_v18 = vmul.f32 0.5, %v121_v16 }
  0x97   :  { %545 = vtanh.f32 %v125_v18 }
  0x9a   :  { %v122_v19 = vpop.f32.mrf.mxu0 }
  0x9b   :  { %v123_v21 = vadd.f32 %v541_v13, %v122_v19 }
  0x9d   :  { %v126_v22 = vmul.f32 0.5, %v123_v21  ;;  %v546_v23 = vpop.eup %545 }
  0x9e   :  { %v129_v24 = vadd.f32 1.0, %v546_v23 }
  0x9f   :  { %547 = vtanh.f32 %v126_v22 }
  0xa0   :  { %v131_v27 = vmul.f32 0.5, %v129_v24 }
  0xa5   :  { %v548_v25 = vpop.eup %547 }
  0xa6   :  { %v130_v26 = vadd.f32 1.0, %v548_v25 }
  0xa8   :  { %v132_v28 = vmul.f32 0.5, %v130_v26 }
  0xaa   :  { %v133_v29 = vpack.c.bf16 %v132_v28, %v131_v27 }
  0xac   :  { %210 = vmatmul.bf16.vlgmr.msra.gmra.mxu1 %v133_v29 }
 0x129   :  { %v211_v35 = vpop.f32.mrf.mxu1 }
 0x12a   :  { %v212_v38 = vadd.f32 %v542_v36, %v211_v35 }
 0x131   :  { %v213_v37 = vpop.f32.mrf.mxu1 }
 0x132   :  { %v214_v39 = vadd.f32 %v542_v36, %v213_v37 }
 0x134   :  { %v216_v40 = vpack.c.bf16 %v214_v39, %v212_v38 }
 0x136   :  { %293 = vmatmul.bf16.vlgmr.msra.gmra.mxu2 %v216_v40 }
 0x1b9   :  { %v294_v48 = vpop.f32.mrf.mxu2 }
 0x1ba   :  { %v295_v49 = vadd.f32 %v543_v47, %v294_v48 }
 0x1bc   :  { %v299_v50 = vmul.f32 0.5, %v295_v49 }
 0x1be   :  { %549 = vtanh.f32 %v299_v50 }
 0x1c1   :  { %v296_v51 = vpop.f32.mrf.mxu2 }
 0x1c2   :  { %v297_v52 = vadd.f32 %v543_v47, %v296_v51 }
 0x1c4   :  { %v300_v53 = vmul.f32 0.5, %v297_v52  ;;  %v550_v54 = vpop.eup %549 }
 0x1c5   :  { %v303_v55 = vadd.f32 1.0, %v550_v54 }
 0x1c6   :  { %551 = vtanh.f32 %v300_v53 }
 0x1c7   :  { %v305_v58 = vmul.f32 0.5, %v303_v55 }
 0x1cc   :  { %v552_v56 = vpop.eup %551 }
 0x1cd   :  { %v304_v57 = vadd.f32 1.0, %v552_v56 }
 0x1cf   :  { %v306_v59 = vmul.f32 0.5, %v304_v57 }
 0x1d1   :  { %v307_v60 = vpack.c.bf16 %v306_v59, %v305_v58 }
 0x1d3   :  { %384 = vmatmul.bf16.vlgmr.msra.gmra.mxu3 %v307_v60 }
 0x256   :  { %v385_v62 = vpop.f32.mrf.mxu3 }
 0x257   :  { %v386_v63 = vadd.f32 %v544_v61, %v385_v62 }
 0x259   :  { %v390_v0 = vadd.f32 %v386_v63, %v212_v38 }
 0x25b   :  { %392 = vst [vmem:[%s729_s9] sm:$0xff] %v390_v0 }
 0x25e   :  { %v387_v1 = vpop.f32.mrf.mxu3 }
 0x25f   :  { %v388_v2 = vadd.f32 %v544_v61, %v387_v1 }
 0x261   :  { %v391_v3 = vadd.f32 %v388_v2, %v214_v39 }
 0x263   :  { %393 = vst [vmem:[%s729_s9 + $0x8] sm:$0xff] %v391_v3 }
 0x264   :  { %398 = vsyncpa [#allocation3], 1 }
 0x265   :  { %399 = vsyncpa [#allocation5], 1 }

</bundles_post_ra>
